<compile_context>
chip_gen: v7x
topology: tpu7x:2x2x1
jax: 0.10.0
libtpu: 0.0.40
codegen_flags: <defaults>
</compile_context>

<pallas_src>
import functools

import jax
import jax.numpy as jnp
from jax.experimental import pallas as pl
from jax.experimental.pallas import tpu as pltpu


def _mlp_kernel(xT_ref, w1_ref, b1_ref, w2_ref, b2_ref, o_ref):
    # xT_ref: (1, TN)  batch on lane axis
    # w1_ref/b1_ref/w2_ref: (H, 1), b2_ref: (1, 1)
    xT = xT_ref[...]                                            # (1, TN)
    # Hidden layer: F=1 outer product on the VPU + bias, then ReLU.
    h = jnp.maximum(w1_ref[...] * xT + b1_ref[...], 0.0)        # (H, TN)
    # Predict layer: O=1 contraction over H as a sublane (XLU) reduce + bias.
    y = jnp.sum(w2_ref[...] * h, axis=0, keepdims=True) + b2_ref[...]  # (1, TN)
    o_ref[...] = y.astype(o_ref.dtype)                          # lane-dense store


def prepare_params(w1, b1, w2, b2):
    """One-time layout prep (hoisted out of the forward hot path).

    w1: (H, F=1) torch layout; b1: (H,); w2: (O=1, H); b2: (O=1,).
    Returns kernel-layout params: w1c (H,1), b1c (H,1), w2c (H,1), b2c (1,1).
    """
    assert w1.shape[1] == 1, "kernel is specialized for n_feature == 1"
    assert w2.shape[0] == 1, "kernel is specialized for n_output == 1"
    w1c = jnp.asarray(w1, jnp.float32).reshape(-1, 1)   # (H, 1)
    b1c = jnp.asarray(b1, jnp.float32).reshape(-1, 1)   # (H, 1)
    w2c = jnp.asarray(w2, jnp.float32).T                # (H, 1)
    b2c = jnp.asarray(b2, jnp.float32).reshape(1, 1)    # (1, 1)
    return w1c, b1c, w2c, b2c


@jax.jit
def net_forward(x, params):
    """x: (N, 1) f32; params from prepare_params(). Returns (N, 1) f32."""
    w1c, b1c, w2c, b2c = params
    n = x.shape[0]
    h = w1c.shape[0]

    # Lane tile: multiple of 128, capped at 512 rows-per-block (v7x VMEM-safe).
    tn = min(512, pl.cdiv(n, 128) * 128)
    n_pad = pl.cdiv(n, tn) * tn

    # (N, 1) -> (1, N) is a free reshape (same contiguous data); pad lanes.
    xT = jnp.asarray(x, jnp.float32).reshape(1, n)
    xT = jnp.pad(xT, ((0, 0), (0, n_pad - n)))

    yT = pl.pallas_call(
        _mlp_kernel,
        out_shape=jax.ShapeDtypeStruct((1, n_pad), jnp.float32),
        grid=(n_pad // tn,),
        in_specs=[
            pl.BlockSpec((1, tn), lambda i: (0, i)),   # xT: tile along lanes
            pl.BlockSpec((h, 1), lambda i: (0, 0)),    # w1 (full, resident)
            pl.BlockSpec((h, 1), lambda i: (0, 0)),    # b1
            pl.BlockSpec((h, 1), lambda i: (0, 0)),    # w2
            pl.BlockSpec((1, 1), lambda i: (0, 0)),    # b2
        ],
        out_specs=pl.BlockSpec((1, tn), lambda i: (0, i)),  # lane-dense output
        compiler_params=pltpu.CompilerParams(
            dimension_semantics=("parallel",)),
    )(xT, w1c, b1c, w2c, b2c)

    # Drop lane padding and restore the torch (N, 1) shape.
    return yT[:, :n].reshape(n, 1)


def _init_linear(key, out_features, in_features):
    """Deterministic torch.nn.Linear-style init: U(-1/sqrt(in), 1/sqrt(in))."""
    kw, kb = jax.random.split(key)
    bound = 1.0 / (in_features ** 0.5)
    w = jax.random.uniform(kw, (out_features, in_features), jnp.float32, -bound, bound)
    b = jax.random.uniform(kb, (out_features,), jnp.float32, -bound, bound)
    return w, b


if __name__ == "__main__":
    n_feature, n_hidden, n_output = 1, 10, 1

    # Same input as the reference script: torch.unsqueeze(torch.linspace(-1, 1, 100), 1)
    x = jnp.linspace(-1.0, 1.0, 100, dtype=jnp.float32)[:, None]   # (100, 1)

    key = jax.random.PRNGKey(0)
    k1, k2 = jax.random.split(key)
    w1, b1 = _init_linear(k1, n_hidden, n_feature)   # hidden:  Linear(1, 10)
    w2, b2 = _init_linear(k2, n_output, n_hidden)    # predict: Linear(10, 1)

    params = prepare_params(w1, b1, w2, b2)          # one-time layout prep
    out = net_forward(x, params)
    jax.block_until_ready(out)

    # Sanity check against a pure-JAX reference of the same forward pass.
    ref = jnp.maximum(x @ w1.T + b1, 0.0) @ w2.T + b2
    assert out.shape == (100, 1)
    assert jnp.allclose(out, ref, atol=1e-5), "mismatch vs reference"

    print("KERNEL_OK")
</pallas_src>

<mosaic_0001>
module attributes {stable_mosaic.version = 11 : i64} {
  func.func @_mlp_kernel(%arg0: i32, %arg1: memref<1x128xf32, #tpu.memory_space<vmem>>, %arg2: memref<10x1xf32, #tpu.memory_space<vmem>>, %arg3: memref<10x1xf32, #tpu.memory_space<vmem>>, %arg4: memref<10x1xf32, #tpu.memory_space<vmem>>, %arg5: memref<1x1xf32, #tpu.memory_space<vmem>>, %arg6: memref<1x128xf32, #tpu.memory_space<vmem>>) attributes {dimension_semantics = [#tpu.dimension_semantics<parallel>], iteration_bounds = array<i64: 1>, scalar_prefetch = 0 : i64, scratch_operands = 0 : i64, tpu.core_type = #tpu.core_type<tc>, window_params = [{transform_indices = @transform_0, window_bounds = array<i64: 1, 128>}, {pipeline_mode = #tpu.pipeline_mode<synchronous>, transform_indices = @transform_1, window_bounds = array<i64: 10, 1>}, {pipeline_mode = #tpu.pipeline_mode<synchronous>, transform_indices = @transform_2, window_bounds = array<i64: 10, 1>}, {pipeline_mode = #tpu.pipeline_mode<synchronous>, transform_indices = @transform_3, window_bounds = array<i64: 10, 1>}, {pipeline_mode = #tpu.pipeline_mode<synchronous>, transform_indices = @transform_4, window_bounds = array<i64: 1, 1>}, {transform_indices = @transform_5, window_bounds = array<i64: 1, 128>}]} {
    %c0 = arith.constant 0 : index
    %c0_0 = arith.constant 0 : index
    %0 = vector.load %arg1[%c0, %c0_0] : memref<1x128xf32, #tpu.memory_space<vmem>>, vector<1x128xf32>
    %c0_1 = arith.constant 0 : index
    %c0_2 = arith.constant 0 : index
    %1 = vector.load %arg2[%c0_1, %c0_2] : memref<10x1xf32, #tpu.memory_space<vmem>>, vector<10x1xf32>
    %2 = vector.broadcast %1 : vector<10x1xf32> to vector<10x128xf32>
    %3 = vector.broadcast %0 : vector<1x128xf32> to vector<10x128xf32>
    %4 = arith.mulf %2, %3 : vector<10x128xf32>
    %c0_3 = arith.constant 0 : index
    %c0_4 = arith.constant 0 : index
    %5 = vector.load %arg3[%c0_3, %c0_4] : memref<10x1xf32, #tpu.memory_space<vmem>>, vector<10x1xf32>
    %6 = vector.broadcast %5 : vector<10x1xf32> to vector<10x128xf32>
    %7 = arith.addf %4, %6 : vector<10x128xf32>
    %cst = arith.constant 0.000000e+00 : f32
    %8 = vector.broadcast %cst : f32 to vector<10x128xf32>
    %9 = arith.maximumf %7, %8 : vector<10x128xf32>
    %c0_5 = arith.constant 0 : index
    %c0_6 = arith.constant 0 : index
    %10 = vector.load %arg4[%c0_5, %c0_6] : memref<10x1xf32, #tpu.memory_space<vmem>>, vector<10x1xf32>
    %11 = vector.broadcast %10 : vector<10x1xf32> to vector<10x128xf32>
    %12 = arith.mulf %11, %9 : vector<10x128xf32>
    %cst_7 = arith.constant dense<0.000000e+00> : vector<128xf32>
    %13 = vector.multi_reduction <add>, %12, %cst_7 [0] : vector<10x128xf32> to vector<128xf32>
    %14 = vector.shape_cast %13 : vector<128xf32> to vector<1x128xf32>
    %c0_8 = arith.constant 0 : index
    %c0_9 = arith.constant 0 : index
    %15 = vector.load %arg5[%c0_8, %c0_9] : memref<1x1xf32, #tpu.memory_space<vmem>>, vector<1x1xf32>
    %16 = vector.broadcast %15 : vector<1x1xf32> to vector<1x128xf32>
    %17 = arith.addf %14, %16 : vector<1x128xf32>
    %c0_10 = arith.constant 0 : index
    %c0_11 = arith.constant 0 : index
    %18 = vector.load %arg6[%c0_10, %c0_11] : memref<1x128xf32, #tpu.memory_space<vmem>>, vector<1x128xf32>
    tpu.vector_store %arg6[%c0_10, %c0_11], %17 {strides = array<i32>} : memref<1x128xf32, #tpu.memory_space<vmem>>, vector<1x128xf32>,
    return
  }
  func.func @transform_0(%arg0: i32) -> (i32, i32) {
    %c0_i32 = arith.constant 0 : i32
    %c0_i32_0 = arith.constant 0 : i32
    return %c0_i32, %arg0 : i32, i32
  }
  func.func @transform_1(%arg0: i32) -> (i32, i32) {
    %c0_i32 = arith.constant 0 : i32
    %c0_i32_0 = arith.constant 0 : i32
    %c0_i32_1 = arith.constant 0 : i32
    return %c0_i32, %c0_i32_0 : i32, i32
  }
  func.func @transform_2(%arg0: i32) -> (i32, i32) {
    %c0_i32 = arith.constant 0 : i32
    %c0_i32_0 = arith.constant 0 : i32
    %c0_i32_1 = arith.constant 0 : i32
    return %c0_i32, %c0_i32_0 : i32, i32
  }
  func.func @transform_3(%arg0: i32) -> (i32, i32) {
    %c0_i32 = arith.constant 0 : i32
    %c0_i32_0 = arith.constant 0 : i32
    %c0_i32_1 = arith.constant 0 : i32
    return %c0_i32, %c0_i32_0 : i32, i32
  }
  func.func @transform_4(%arg0: i32) -> (i32, i32) {
    %c0_i32 = arith.constant 0 : i32
    %c0_i32_0 = arith.constant 0 : i32
    %c0_i32_1 = arith.constant 0 : i32
    return %c0_i32, %c0_i32_0 : i32, i32
  }
  func.func @transform_5(%arg0: i32) -> (i32, i32) {
    %c0_i32 = arith.constant 0 : i32
    %c0_i32_0 = arith.constant 0 : i32
    return %c0_i32, %arg0 : i32, i32
  }
}

</mosaic_0001>

<bundles_post_ra>
// kernel: net_forward.1
= control target key start
LH: loop header
LB: loop body
LE: loop exit
PB: predicated region body
PF: predicated region fallthrough
CT: control target
= control target key end

     0   :  { %v102_v0 = vmov 0   ;;  %vm73_vm0 = vcmask 1041408   ;;  %v88_v26 = vlaneseq  ;;  %s160_s2 = inlined_call_operand.vmem [shape: f32[10,1], index: 2, kind: input, shape index: {}]   ;;  %s161_s1 = inlined_call_operand.vmem [shape: f32[10,1], index: 1, kind: input, shape index: {}]   ;;  %s162_s4 = inlined_call_operand.<no memory space> [shape: f32[1,1], index: 4, kind: input, shape index: {}]   ;;  %s163_s3 = inlined_call_operand.vmem [shape: f32[10,1], index: 3, kind: input, shape index: {}]   ;;  %s164_s0 = inlined_call_operand.vmem [shape: f32[1,128], index: 0, kind: input, shape index: {}]   ;;  %s165_s5 = inlined_call_operand.vmem [shape: f32[1,128], index: 5, kind: output, shape index: {}]  }
   0x1   :  { %101 = vset.pattern.permute.xlu1 %v102_v0  ;;  %100 = vset.pattern.permute.xlu0 %v102_v0  ;;  %v44_v1 = vld [vmem:[%s160_s2 + $0x8] sm:$0x3]  ;;  %v10_v3 = vstv %s162_s4  ;;  %v43_v4 = vld [vmem:[%s160_s2] sm:$0xff] }
   0x2   :  { %v24_v2 = vld [vmem:[%s161_s1 + $0x8] sm:$0x3]  ;;  %52 = vperm.xlu1 %101, %v44_v1   ;;  %11 = vst [vmem:[#allocation2] sm:$0x1] %v10_v3  ;;  %v23_v5 = vld [vmem:[%s161_s1] sm:$0xff]  ;;  %v89_v29 = vshrl.u32 %v88_v26, 7 }
   0x3   :  { %32 = vperm.xlu0 %100, %v24_v2   ;;  %v59_v6 = vld [vmem:[%s163_s3] sm:$0xff]  ;;  %v60_v7 = vld [vmem:[%s163_s3 + $0x8] sm:$0x3] }
   0x4   :  { %v98_v9 = vld [vmem:[%s164_s0] ss:$0 sm:$0xff]  ;;  %v90_v31 = vsub.s32 0, %v89_v29 }
   0x6   :  { %47 = vperm.xlu1 %101, %v43_v4  }
   0x7   :  { %27 = vperm.xlu0 %100, %v23_v5  }
   0x9   :  { %v82_v8 = vld [vmem:[#allocation2] sm:$0x1] }
   0xa   :  { %63 = vperm.xlu1 %101, %v59_v6  }
   0xb   :  { %68 = vperm.xlu0 %100, %v60_v7  }
   0xf   :  { %85 = vperm.xlu0 %100, %v82_v8  }
  0x81   :  { %v53_v10 = vpop.permute.xlu1 %52 }
  0x82   :  { %v33_v11 = vpop.permute.xlu0 %32 }
  0x83   :  { %v42_v12 = vmul.f32 %v98_v9, %v33_v11 }
  0x85   :  { %v56_v13 = vadd.f32 %v53_v10, %v42_v12  ;;  %v48_v14 = vpop.permute.xlu1 %47 }
  0x86   :  { %v28_v15 = vpop.permute.xlu0 %27 }
  0x87   :  { %v41_v16 = vmul.f32 %v98_v9, %v28_v15  ;;  %v58_v18 = vmax.f32 %v56_v13, 0.0 }
  0x89   :  { %v55_v17 = vadd.f32 %v48_v14, %v41_v16  ;;  %v64_v22 = vpop.permute.xlu1 %63 }
  0x8a   :  { %v69_v19 = vpop.permute.xlu0 %68 }
  0x8b   :  { %v57_v20 = vmax.f32 %v55_v17, 0.0  ;;  %v72_v21 = vmul.f32 %v69_v19, %v58_v18 }
  0x8d   :  { %v71_v23 = vmul.f32 %v64_v22, %v57_v20  ;;  %v74_v24 = vsel %vm73_vm0, %v72_v21, 0.0 }
  0x8e   :  { %v86_v33 = vpop.permute.xlu0 %85 }
  0x8f   :  { %v75_v25 = vadd.f32 %v74_v24, %v71_v23  ;;  %v91_v36 = vrot.slane %v86_v33, %v90_v31 }
  0x91   :  { %v76_v27 = vrot.slane %v75_v25, 4 }
  0x93   :  { %v77_v28 = vadd.f32 %v76_v27, %v75_v25 }
  0x95   :  { %v78_v30 = vrot.slane %v77_v28, 2 }
  0x97   :  { %v79_v32 = vadd.f32 %v78_v30, %v77_v28 }
  0x99   :  { %v80_v34 = vrot.slane %v79_v32, 1 }
  0x9b   :  { %v81_v35 = vadd.f32 %v80_v34, %v79_v32 }
  0x9d   :  { %v92_v37 = vadd.f32 %v91_v36, %v81_v35 }
  0x9f   :  { %93 = vst [vmem:[%s165_s5] sm:$0x1] %v92_v37 }

</bundles_post_ra>
